<compile_context>
chip_gen: v7x
topology: tpu7x:2x2x1
jax: 0.10.0
libtpu: 0.0.40
codegen_flags: <defaults>
</compile_context>

<pallas_src>
import functools

import jax
import jax.numpy as jnp
from jax.experimental import pallas as pl
from jax.experimental.pallas import tpu as pltpu


def _poly_loss_kernel(tgt_ref, logits_ref, out_ref, *, epsilon, label_smoothing,
                      n_rows):
    i = pl.program_id(0)

    # Init the resident (1, 1) accumulator on the first tile.
    @pl.when(i == 0)
    def _():
        out_ref[...] = jnp.zeros_like(out_ref)

    logits = logits_ref[...].astype(jnp.float32)              # (TN, C) f32
    tgt = tgt_ref[...]                                         # (TN, 1) int32
    TN, C = logits.shape

    # Row-wise max / log-sum-exp along the class (lane) axis.
    m = jnp.max(logits, axis=1, keepdims=True)                 # (TN, 1)
    ez = jnp.exp(logits - m)                                   # (TN, C)  EUP
    se = jnp.sum(ez, axis=1, keepdims=True)                    # (TN, 1)  XLU
    lse = jnp.log(se)                                          # (TN, 1)

    # Gather of the target-class logit via broadcasted-iota compare (no
    # dynamic_gather primitive on TPU; a masked lane-reduce is the idiom).
    class_ids = jax.lax.broadcasted_iota(jnp.int32, (TN, C), 1)
    hit = class_ids == tgt                                     # (TN, C) bool
    logit_t = jnp.sum(jnp.where(hit, logits, 0.0), axis=1, keepdims=True)

    log_p_t = logit_t - m - lse                                # (TN, 1)
    p_t = jnp.exp(log_p_t)                                     # softmax[target]

    # Per-row fused loss:
    #   (1-ls) * (-log p_t) + (ls/C) * sum_c(-log p_c) + eps * (1 - p_t)
    per_row = (1.0 - label_smoothing) * (-log_p_t) + epsilon * (1.0 - p_t)
    if label_smoothing != 0.0:  # ls is a Python float -> static specialization
        sum_logits = jnp.sum(logits, axis=1, keepdims=True)    # (TN, 1)
        # sum_c(-log p_c) = C*(m + lse) - sum_c logits
        sum_neg_log_p = C * (m + lse) - sum_logits
        per_row = per_row + (label_smoothing / C) * sum_neg_log_p

    # Mask rows beyond N (partial last tile; padded rows may hold garbage).
    row_ids = i * TN + jax.lax.broadcasted_iota(jnp.int32, (TN, 1), 0)
    per_row = jnp.where(row_ids < n_rows, per_row, 0.0)

    # Accumulate the partial sum into the resident output block.
    out_ref[...] = out_ref[...] + jnp.sum(per_row, axis=0, keepdims=True)

    # Finalize: divide by the true batch size exactly once.
    @pl.when(i == pl.num_programs(0) - 1)
    def _():
        out_ref[...] = out_ref[...] * jnp.float32(1.0 / n_rows)


def poly_loss(outputs, targets, *, epsilon=2.0, label_smoothing=0.0,
              block_rows=None):
    """outputs: (N, C) float logits (f32 or bf16), targets: (N,) ints -> scalar."""
    N, C = outputs.shape
    tgt2d = targets.astype(jnp.int32).reshape(N, 1)

    # Batch tile: ~2 MiB of logits per input buffer (the pipeline double-buffers
    # it), a multiple of 8 sublanes, capped at 1024 rows (mem-bound roofline
    # plateau) and at the padded batch size.
    itemsize = jnp.dtype(outputs.dtype).itemsize
    if block_rows is None:
        budget_bytes = 2 * 1024 * 1024
        tn = budget_bytes // max(C * itemsize, 1)
        tn = max(8, min(int(tn), 1024))
    else:
        tn = int(block_rows)
    tn = max(8, (tn // 8) * 8)
    n_pad8 = ((N + 7) // 8) * 8
    tn = min(tn, n_pad8)
    grid = (pl.cdiv(N, tn),)

    kernel = functools.partial(
        _poly_loss_kernel,
        epsilon=float(epsilon),
        label_smoothing=float(label_smoothing),
        n_rows=N,
    )

    out = pl.pallas_call(
        kernel,
        out_shape=jax.ShapeDtypeStruct((1, 1), jnp.float32),
        grid_spec=pltpu.PrefetchScalarGridSpec(
            num_scalar_prefetch=0,
            grid=grid,
            in_specs=[
                pl.BlockSpec((tn, 1), lambda i: (i, 0)),   # targets (TN, 1)
                pl.BlockSpec((tn, C), lambda i: (i, 0)),   # logits  (TN, C)
            ],
            # Same block index every step -> output stays resident (accumulator).
            out_specs=pl.BlockSpec((1, 1), lambda i: (0, 0)),
        ),
        compiler_params=pltpu.CompilerParams(
            # Sequential accumulation across tiles -> reduction axis is arbitrary.
            dimension_semantics=("arbitrary",),
            # Above v5e's 16 MiB default scoped limit; safe on v6e/v7x too.
            vmem_limit_bytes=32 * 1024 * 1024,
        ),
    )(tgt2d, outputs)
    return out[0, 0]


def _poly_loss_ref(outputs, targets, *, epsilon=2.0, label_smoothing=0.0):
    """Pure-JAX reference mirroring the PyTorch module."""
    N, C = outputs.shape
    log_p = jax.nn.log_softmax(outputs.astype(jnp.float32), axis=1)
    p = jnp.exp(log_p)
    onehot = jax.nn.one_hot(targets, C, dtype=jnp.float32)
    nll = -jnp.sum(onehot * log_p, axis=1)
    smooth = -jnp.mean(log_p, axis=1)
    ce = jnp.mean((1.0 - label_smoothing) * nll + label_smoothing * smooth)
    p_t = jnp.sum(onehot * p, axis=1)
    return jnp.mean(ce + epsilon * (1.0 - p_t))


if __name__ == "__main__":
    # Small shapes consistent with the module's forward: logits (N, C), targets (N,).
    # N=20 with block_rows=8 -> 3 grid tiles including a masked partial last tile.
    N, C = 20, 96
    key = jax.random.PRNGKey(0)
    k_logits, k_tgt = jax.random.split(key)
    outputs = jax.random.normal(k_logits, (N, C), dtype=jnp.float32)
    targets = jax.random.randint(k_tgt, (N,), 0, C, dtype=jnp.int32)

    # f32 logits, with and without label smoothing (covers both traced branches).
    for ls in (0.0, 0.1):
        loss = poly_loss(outputs, targets, epsilon=2.0, label_smoothing=ls,
                         block_rows=8)
        loss = jax.block_until_ready(loss)
        ref = _poly_loss_ref(outputs, targets, epsilon=2.0, label_smoothing=ls)
        assert jnp.allclose(loss, ref, atol=1e-5, rtol=1e-5), (ls, loss, ref)

    # Auto tile-size path (no block_rows override) on the same inputs.
    loss_auto = poly_loss(outputs, targets, epsilon=2.0, label_smoothing=0.1)
    loss_auto = jax.block_until_ready(loss_auto)
    ref_auto = _poly_loss_ref(outputs, targets, epsilon=2.0, label_smoothing=0.1)
    assert jnp.allclose(loss_auto, ref_auto, atol=1e-5, rtol=1e-5), (loss_auto, ref_auto)

    # bf16 logits stay bf16 in HBM; the kernel upcasts per-tile in VMEM.
    out_bf16 = outputs.astype(jnp.bfloat16)
    loss_b = poly_loss(out_bf16, targets, epsilon=2.0, label_smoothing=0.0,
                       block_rows=8)
    loss_b = jax.block_until_ready(loss_b)
    ref_b = _poly_loss_ref(out_bf16.astype(jnp.float32), targets,
                           epsilon=2.0, label_smoothing=0.0)
    assert jnp.allclose(loss_b, ref_b, atol=1e-4, rtol=1e-4), (loss_b, ref_b)

    print("KERNEL_OK")
</pallas_src>

<mosaic_0001>
module attributes {stable_mosaic.version = 11 : i64} {
  func.func @_poly_loss_kernel(%arg0: i32, %arg1: memref<8x1xi32, #tpu.memory_space<vmem>>, %arg2: memref<8x96xf32, #tpu.memory_space<vmem>>, %arg3: memref<1x1xf32, #tpu.memory_space<vmem>>) attributes {dimension_semantics = [#tpu.dimension_semantics<arbitrary>], iteration_bounds = array<i64: 3>, scalar_prefetch = 0 : i64, scratch_operands = 0 : i64, tpu.core_type = #tpu.core_type<tc>, window_params = [{transform_indices = @transform_0, window_bounds = array<i64: 8, 1>}, {transform_indices = @transform_1, window_bounds = array<i64: 8, 96>}, {pipeline_mode = #tpu.pipeline_mode<synchronous>, transform_indices = @transform_2, window_bounds = array<i64: 1, 1>}]} {
    %c0_i32 = arith.constant 0 : i32
    %0 = arith.cmpi eq, %arg0, %c0_i32 : i32
    %1 = arith.extui %0 : i1 to i32
    %c0_i32_0 = arith.constant 0 : i32
    %2 = arith.cmpi ne, %1, %c0_i32_0 : i32
    scf.if %2 {
      %cst_18 = arith.constant 0.000000e+00 : f32
      %48 = vector.broadcast %cst_18 : f32 to vector<1x1xf32>
      %c0_19 = arith.constant 0 : index
      %c0_20 = arith.constant 0 : index
      %49 = vector.load %arg3[%c0_19, %c0_20] : memref<1x1xf32, #tpu.memory_space<vmem>>, vector<1x1xf32>
      tpu.vector_store %arg3[%c0_19, %c0_20], %48 {strides = array<i32>} : memref<1x1xf32, #tpu.memory_space<vmem>>, vector<1x1xf32>,
    } else {
    }
    %c0 = arith.constant 0 : index
    %c0_1 = arith.constant 0 : index
    %3 = vector.load %arg2[%c0, %c0_1] : memref<8x96xf32, #tpu.memory_space<vmem>>, vector<8x96xf32>
    %c0_2 = arith.constant 0 : index
    %c0_3 = arith.constant 0 : index
    %4 = vector.load %arg1[%c0_2, %c0_3] : memref<8x1xi32, #tpu.memory_space<vmem>>, vector<8x1xi32>
    %cst = arith.constant dense<0xFF800000> : vector<8xf32>
    %5 = vector.multi_reduction <maximumf>, %3, %cst [1] : vector<8x96xf32> to vector<8xf32>
    %6 = vector.shape_cast %5 : vector<8xf32> to vector<8x1xf32>
    %7 = vector.broadcast %6 : vector<8x1xf32> to vector<8x96xf32>
    %8 = arith.subf %3, %7 : vector<8x96xf32>
    %9 = math.exp %8 : vector<8x96xf32>
    %cst_4 = arith.constant dense<0.000000e+00> : vector<8xf32>
    %10 = vector.multi_reduction <add>, %9, %cst_4 [1] : vector<8x96xf32> to vector<8xf32>
    %11 = vector.shape_cast %10 : vector<8xf32> to vector<8x1xf32>
    %12 = math.log %11 : vector<8x1xf32>
    %13 = tpu.iota {dimensions = array<i32: 1>} : vector<8x96xi32>
    %14 = vector.broadcast %4 : vector<8x1xi32> to vector<8x96xi32>
    %15 = arith.cmpi eq, %13, %14 : vector<8x96xi32>
    %cst_5 = arith.constant 0.000000e+00 : f32
    %16 = vector.broadcast %cst_5 : f32 to vector<8x96xf32>
    %17 = arith.select %15, %3, %16 : vector<8x96xi1>, vector<8x96xf32>
    %cst_6 = arith.constant dense<0.000000e+00> : vector<8xf32>
    %18 = vector.multi_reduction <add>, %17, %cst_6 [1] : vector<8x96xf32> to vector<8xf32>
    %19 = vector.shape_cast %18 : vector<8xf32> to vector<8x1xf32>
    %20 = arith.subf %19, %6 : vector<8x1xf32>
    %21 = arith.subf %20, %12 : vector<8x1xf32>
    %22 = math.exp %21 : vector<8x1xf32>
    %cst_7 = arith.constant 0.000000e+00 : f32
    %23 = vector.broadcast %cst_7 : f32 to vector<8x1xf32>
    %24 = arith.subf %23, %21 : vector<8x1xf32>
    %cst_8 = arith.constant 1.000000e+00 : f32
    %25 = vector.broadcast %cst_8 : f32 to vector<8x1xf32>
    %26 = arith.mulf %25, %24 : vector<8x1xf32>
    %cst_9 = arith.constant 1.000000e+00 : f32
    %27 = vector.broadcast %cst_9 : f32 to vector<8x1xf32>
    %28 = arith.subf %27, %22 : vector<8x1xf32>
    %cst_10 = arith.constant 2.000000e+00 : f32
    %29 = vector.broadcast %cst_10 : f32 to vector<8x1xf32>
    %30 = arith.mulf %29, %28 : vector<8x1xf32>
    %31 = arith.addf %26, %30 : vector<8x1xf32>
    %c8_i32 = arith.constant 8 : i32
    %32 = arith.muli %arg0, %c8_i32 : i32
    %33 = tpu.iota {dimensions = array<i32: 0>} : vector<8x1xi32>
    %34 = vector.broadcast %32 : i32 to vector<8x1xi32>
    %35 = arith.addi %34, %33 : vector<8x1xi32>
    %c20_i32 = arith.constant 20 : i32
    %36 = vector.broadcast %c20_i32 : i32 to vector<8x1xi32>
    %37 = arith.cmpi slt, %35, %36 : vector<8x1xi32>
    %cst_11 = arith.constant 0.000000e+00 : f32
    %38 = vector.broadcast %cst_11 : f32 to vector<8x1xf32>
    %39 = arith.select %37, %31, %38 : vector<8x1xi1>, vector<8x1xf32>
    %c0_12 = arith.constant 0 : index
    %c0_13 = arith.constant 0 : index
    %40 = vector.load %arg3[%c0_12, %c0_13] : memref<1x1xf32, #tpu.memory_space<vmem>>, vector<1x1xf32>
    %cst_14 = arith.constant dense<0.000000e+00> : vector<1xf32>
    %41 = vector.multi_reduction <add>, %39, %cst_14 [0] : vector<8x1xf32> to vector<1xf32>
    %42 = vector.shape_cast %41 : vector<1xf32> to vector<1x1xf32>
    %43 = arith.addf %40, %42 : vector<1x1xf32>
    %c0_15 = arith.constant 0 : index
    %c0_16 = arith.constant 0 : index
    %44 = vector.load %arg3[%c0_15, %c0_16] : memref<1x1xf32, #tpu.memory_space<vmem>>, vector<1x1xf32>
    tpu.vector_store %arg3[%c0_15, %c0_16], %43 {strides = array<i32>} : memref<1x1xf32, #tpu.memory_space<vmem>>, vector<1x1xf32>,
    %c2_i32 = arith.constant 2 : i32
    %45 = arith.cmpi eq, %arg0, %c2_i32 : i32
    %46 = arith.extui %45 : i1 to i32
    %c0_i32_17 = arith.constant 0 : i32
    %47 = arith.cmpi ne, %46, %c0_i32_17 : i32
    scf.if %47 {
      %c0_18 = arith.constant 0 : index
      %c0_19 = arith.constant 0 : index
      %48 = vector.load %arg3[%c0_18, %c0_19] : memref<1x1xf32, #tpu.memory_space<vmem>>, vector<1x1xf32>
      %cst_20 = arith.constant 5.000000e-02 : f32
      %49 = vector.broadcast %cst_20 : f32 to vector<1x1xf32>
      %50 = arith.mulf %48, %49 : vector<1x1xf32>
      %c0_21 = arith.constant 0 : index
      %c0_22 = arith.constant 0 : index
      %51 = vector.load %arg3[%c0_21, %c0_22] : memref<1x1xf32, #tpu.memory_space<vmem>>, vector<1x1xf32>
      tpu.vector_store %arg3[%c0_21, %c0_22], %50 {strides = array<i32>} : memref<1x1xf32, #tpu.memory_space<vmem>>, vector<1x1xf32>,
    } else {
    }
    return
  }
  func.func @transform_0(%arg0: i32) -> (i32, i32) {
    %c0_i32 = arith.constant 0 : i32
    %c0_i32_0 = arith.constant 0 : i32
    return %arg0, %c0_i32 : i32, i32
  }
  func.func @transform_1(%arg0: i32) -> (i32, i32) {
    %c0_i32 = arith.constant 0 : i32
    %c0_i32_0 = arith.constant 0 : i32
    return %arg0, %c0_i32 : i32, i32
  }
  func.func @transform_2(%arg0: i32) -> (i32, i32) {
    %c0_i32 = arith.constant 0 : i32
    %c0_i32_0 = arith.constant 0 : i32
    %c0_i32_1 = arith.constant 0 : i32
    return %c0_i32, %c0_i32_0 : i32, i32
  }
}

</mosaic_0001>

<bundles_post_ra>
// kernel: tpu_custom_call.1
= control target key start
LH: loop header
LB: loop body
LE: loop exit
PB: predicated region body
PF: predicated region fallthrough
CT: control target
= control target key end

     0   :  { %7 = vsyncpa [#allocation3], 0  ;;  %s357_s9 = smov 0   ;;  %s407_s0 = inlined_call_operand.vmem [shape: s32[20,1], index: 0, kind: input, shape index: {}]   ;;  %s408_s1 = inlined_call_operand.vmem [shape: f32[20,96], index: 1, kind: input, shape index: {}]   ;;  %s409_s2 = inlined_call_operand.hbm [shape: f32[1,1], index: 2, kind: output, shape index: {}]  }
   0x1 LB: > { %s363_s10 = sadd.s32 4294967295, %s337_s9   ;;  %p267_p0 = scmp.ge.s32.totalorder %s337_s9, 1  ;;  %s337_s9 = sphi %s357_s9, %s13_s9  }
   0x2   : > { %p116_p1 = scmp.lt.s32.totalorder %s337_s9, 4 }
   0x4   : > { %p117_p2 = pnand %p267_p0, %p116_p1 }
   0x5   : > { %p136_p3 = scmp.lt.s32.totalorder (!%p117_p2), %s363_s10, 2  ;;  %p270_p4 = scmp.ne.s32.totalorder (!%p117_p2), %s363_s10, 0 }
   0x6   : > { %120 = sbr.rel (%p117_p2) target bundleno = 408 (0x198), region = 28 }
   0xd   : > { %s137_s11 = scalar_select %p136_p3, %s363_s10, 2 }
   0xe   : > { %147 = sbr.rel (%p270_p4) target bundleno = 21 (0x15), region = 32  ;;  %vm148_vm0 = vcmask (!%p270_p4), 0   ;;  %v339_v0 = vmov (!%p270_p4), 0.0  }
   0xf   : > { %s268_s12 = sshll.u32 %s137_s11, 3  ;;  %149 = vst.msk [vmem:[#allocation2] sm:$0x1] (!%p270_p4), %vm148_vm0, %v339_v0 }
  0x10   : > { %s139_s15 = scalar_lea.vmem %s407_s0, %s268_s12  ;;  %s143_s18 = scalar_lea.vmem %s408_s1, %s268_s12 }
  0x15 PF: > { %v150_v1 = vld [vmem:[%s143_s18] sm:$0xff]  ;;  %vm152_vm1 = vcmask 785408   ;;  %v340_v3 = vmov 0   ;;  %v164_v8 = vlaneseq  ;;  %s271_s19 = sshll.u32 %s363_s10, 3  ;;  %vm197_vm4 = vcmask 0   ;;  %p272_p5 = scmp.ne.s32.totalorder %s363_s10, 2 }
  0x16   : > { %v153_v2 = vsel %vm152_vm1, %v150_v1, -inf  ;;  %294 = vset.pattern.permute.xlu0 %v340_v3  ;;  %v151_v4 = vld [vmem:[%s139_s15] sm:$0xff]  ;;  %v185_v23 = vstv %s271_s19  ;;  %v189_v36 = vld [vmem:[#allocation2] sm:$0x1] }
  0x17   : > { %154 = vmax.xlane.f32.xlu0 %v153_v2  ;;  %v165_v9 = vand.u32 127, %v164_v8  ;;  %v184_v22 = vshrl.u32 %v164_v8, 7 }
  0x19   : > { %v186_v25 = vadd.s32 %v185_v23, %v184_v22 }
  0x1b   : > { %vm187_vm3 = vcmp.lt.s32.totalorder %v186_v25, 20 }
  0x2d   : > { %167 = vperm.xlu0 %294, %v151_v4  }
  0xa4   : > { %v155_v5 = vpop.xlane.xlu0 %154 }
  0xa5   : > { %v156_v6 = vsub.f32 %v150_v1, %v155_v5 }
  0xa7   : > { %v157_v7 = vmul.f32 1.442695, %v156_v6 }
  0xa9   : > { %295 = vpow2.f32 %v157_v7 }
  0xac   : > { %v168_v10 = vpop.permute.xlu0 %167 }
  0xad   : > { %vm169_vm2 = vcmp.eq.s32.totalorder %v165_v9, %v168_v10 }
  0xae   : > { %v170_v12 = vsel %vm169_vm2, %v150_v1, 0.0 }
  0xaf   : > { %v171_v14 = vsel %vm152_vm1, %v170_v12, 0.0 }
  0xb3   : > { %v296_v11 = vpop.eup %295 }
  0xb4   : > { %v159_v13 = vsel %vm152_vm1, %v296_v11, 0.0 }
  0xb5   : > { %160 = vadd.xlane.f32.xlu1 %v159_v13 }
  0xb9   : > { %172 = vadd.xlane.f32.xlu1 %v171_v14 }
 0x142   : > { %v161_v15 = vpop.xlane.xlu1 %160 }
 0x143   : > { %297 = vlog2.f32 %v161_v15 }
 0x146   : > { %v173_v16 = vpop.xlane.xlu1 %172 }
 0x147   : > { %v174_v19 = vsub.f32 %v173_v16, %v155_v5 }
 0x14d   : > { %v298_v17 = vpop.eup %297 }
 0x14e   : > { %v163_v18 = vmul.f32 0.6931472, %v298_v17 }
 0x150   : > { %v175_v20 = vsub.f32 %v174_v19, %v163_v18 }
 0x152   : > { %v176_v21 = vmul.f32 1.442695, %v175_v20  ;;  %v178_v27 = vsub.f32 0.0, %v175_v20 }
 0x154   : > { %299 = vpow2.f32 %v176_v21 }
 0x15e   : > { %v300_v24 = vpop.eup %299 }
 0x15f   : > { %v179_v26 = vsub.f32 1.0, %v300_v24 }
 0x161   : > { %v180_v28 = vmul.f32 2.0, %v179_v26 }
 0x163   : > { %v181_v29 = vadd.f32 %v180_v28, %v178_v27 }
 0x165   : > { %v188_v30 = vsel %vm187_vm3, %v181_v29, 0.0 }
 0x166   : > { %v190_v31 = vrot.slane %v188_v30, 4 }
 0x168   : > { %v191_v32 = vadd.f32 %v190_v31, %v188_v30 }
 0x16a   : > { %v192_v33 = vrot.slane %v191_v32, 2 }
 0x16c   : > { %v193_v34 = vadd.f32 %v192_v33, %v191_v32 }
 0x16e   : > { %v194_v35 = vrot.slane %v193_v34, 1  ;;  %202 = sbr.rel (%p272_p5) target bundleno = 383 (0x17f), region = 36 }
 0x170   : > { %v195_v37 = vadd.f32 %v194_v35, %v193_v34 }
 0x172   : > { %v196_v38 = vadd.f32 %v195_v37, %v189_v36 }
 0x174   : > { %198 = vst.msk [vmem:[#allocation2] sm:$0x1] %vm197_vm4, %v196_v38 }
 0x17b   : > { %v203_v39 = vld [vmem:[#allocation2] sm:$0x1] }
 0x17c   : > { %v204_v40 = vmul.f32 0.05, %v203_v39 }
 0x17e   : > { %205 = vst.msk [vmem:[#allocation2] sm:$0x1] %vm197_vm4, %v204_v40 }
 0x17f PF: > { %p281_p6 = scmp.eq.s32.totalorder %s363_s10, 2  ;;  %s341_s20 = smov [#allocation2]  }
 0x180   : > { %s213_s21 = sshll.u32 %s341_s20, 4  ;;  %s214_s21 = int_to_ptr.vmem [resolvable:$true] %s213_s21 }
 0x181   : > { %s301_s22 = scalar_lea.vmem %s214_s21, 16  ;;  %s307_s23 = scalar_lea.vmem %s214_s21, 32 }
 0x182   : > { %p302_p7 = scmp.ne.s32.totalorder %s214_s21, %s301_s22  ;;  %p308_p10 = scmp.lt.s32.totalorder %s214_s21, %s214_s21 }
 0x183   : > { %p309_p11 = scmp.lt.s32.totalorder %s307_s23, %s301_s22 }
 0x184   : > { %p303_p8 = pnand %p302_p7, %p281_p6 }
 0x185   : > { %p310_p12 = por %p309_p11, %p308_p10 }
 0x186   : > { %p304_p9 = pneg %p303_p8 }
 0x188   : > { %p311_p13 = pnand %p310_p12, %p304_p9 }
 0x18a   : > { %314 = shalt.err (!%p311_p13)
}
 0x18b   : > { %s315_s26 = scalar_lea.hbm %s409_s2, 16 }
 0x18c   : > { %p316_p0 = scmp.ne.s32.totalorder %s409_s2, %s315_s26  ;;  %p321_p3 = scmp.lt.u32.totalorder %s315_s26, %s409_s2 }
 0x18e   : > { %p317_p1 = pnand %p316_p0, %p281_p6 }
 0x190   : > { %p318_p2 = pneg %p317_p1 }
 0x192   : > { %p323_p4 = pnand %p321_p3, %p318_p2 }
 0x194   : > { %326 = shalt.err (!%p323_p4)
}
 0x195   : > { %278 = dma.vmem_to_hbm [thread:$0]  (%p281_p6), %s214_s21, 16, %s409_s2, [#allocation3]  }
 0x196   : > { %332 = dma.done.wait (%p281_p6), [#allocation3], 16  }
 0x197   : > { %334 = vsyncadd (%p281_p6), [#allocation3], 4294967280 }
 0x198 PF: > { %s13_s9 = sadd.s32 1, %s337_s9  }
 0x199   : > { %p10_p5 = scmp.ge.s32.totalorder %s13_s9, 5  }
 0x19b   :  { %12 = sbr.rel (!%p10_p5) target bundleno = 1 (0x1), region = 66 }
 0x1a2   :  { %226 = vsyncpa [#allocation3], 1 }
 0x1a3   :  { %228 = vsyncpa [#allocation3 + $0x1], 1 }

</bundles_post_ra>
